<compile_context>
chip_gen: v6e
topology: v6e:2x2x1
jax: 0.10.0
libtpu: 0.0.40
codegen_flags: <defaults>
</compile_context>

<pallas_src>
import functools

import jax
import jax.numpy as jnp
from jax.experimental import pallas as pl
from jax.experimental.pallas import tpu as pltpu

EPS = 1e-5
NEG_SLOPE = 0.01      # torch.nn.LeakyReLU default
LANE = 128


def _leaky(x):
    return jnp.where(x > 0, x, NEG_SLOPE * x)


def _largest_divisor_leq(n, k):
    k = max(1, min(n, int(k)))
    while n % k:
        k -= 1
    return k


def _choose_l_tile(L, H0, D, l_tile):
    """Sequence-tile size: as large as possible (amortizes ~0.35us/grid-step overhead),
    capped by a ~4 MiB bf16 fc1-weight slab (double-buffered by the pipeline) and a
    modest unroll bound for the sublane-stack."""
    if l_tile is not None:
        return _largest_divisor_leq(L, l_tile)
    budget = max(1, (4 * 1024 * 1024) // max(1, 2 * D * H0))
    return _largest_divisor_leq(L, min(L, budget, 128))


def _make_kernel(B, LT, H0, H1, total_rows):
    """Fused forward kernel for static shapes. total_rows = B * seq_len (BN2 population)."""
    inv_rows = 1.0 / float(total_rows)

    def kernel(x_ref, wfc_ref, g1_ref, be1_ref, w1_ref, g2_ref, be2_ref, w2_ref,
               o_ref, sum_sc, sumsq_sc, ycache_sc):
        p = pl.program_id(0)   # 0 = compute/stats pass, 1 = emit pass
        t = pl.program_id(1)   # sequence-tile index

        @pl.when(jnp.logical_and(p == 0, t == 0))
        def _init():
            sum_sc[...] = jnp.zeros_like(sum_sc)
            sumsq_sc[...] = jnp.zeros_like(sumsq_sc)

        # ---------- pass 0: fc1 + BN1 + deconv1 + LeakyReLU + BN2 stats + cache ----------
        @pl.when(p == 0)
        def _compute_and_cache():
            x = x_ref[...]                                          # (B, D) bf16
            # One lane-dense fc1 matmul; column order of wfc is [l_local, h0].
            h = jnp.dot(x, wfc_ref[0], preferred_element_type=jnp.float32)  # (B, LT*H0) f32
            # fc1 bias omitted: it cancels exactly under training-mode BatchNorm1d.
            mu = jnp.mean(h, axis=0, keepdims=True)                 # (1, LT*H0)
            var = jnp.maximum(jnp.mean(h * h, axis=0, keepdims=True) - mu * mu, 0.0)
            scale1 = g1_ref[0] * jax.lax.rsqrt(var + EPS)           # BN1 folded to scale/shift
            shift1 = be1_ref[0] - mu * scale1
            hb = h * scale1 + shift1                                # (B, LT*H0) f32, lane-dense

            # Stack the LT sequence positions along sublanes -> (LT*B, H0); then deconv1
            # and (later) deconv2 are single MXU matmuls batched over all positions.
            z = jnp.concatenate([hb[:, l * H0:(l + 1) * H0] for l in range(LT)], axis=0)
            y = jnp.dot(z.astype(jnp.bfloat16), w1_ref[...],
                        preferred_element_type=jnp.float32)          # (LT*B, H1) f32
            y = _leaky(y)

            # Global BN2 batch statistics over all B*L rows (carried in scratch).
            sum_sc[...] += jnp.sum(y, axis=0, keepdims=True)
            sumsq_sc[...] += jnp.sum(y * y, axis=0, keepdims=True)

            # Spill activations to the VMEM cache (bf16 is enough: deconv2 consumes bf16).
            ycache_sc[t] = y.astype(jnp.bfloat16)

        # ---------- pass 1: BN2 (global stats) + deconv2 + LeakyReLU + store ----------
        @pl.when(p == 1)
        def _emit():
            mu2 = sum_sc[...] * inv_rows                            # (1, H1)
            var2 = jnp.maximum(sumsq_sc[...] * inv_rows - mu2 * mu2, 0.0)
            scale2 = g2_ref[...] * jax.lax.rsqrt(var2 + EPS)        # BN2 folded to scale/shift
            shift2 = be2_ref[...] - mu2 * scale2

            y = ycache_sc[t].astype(jnp.float32)                    # (LT*B, H1)
            yn = (y * scale2 + shift2).astype(jnp.bfloat16)
            o = jnp.dot(yn, w2_ref[...], preferred_element_type=jnp.float32)  # (LT*B, VPAD)
            o_ref[0] = _leaky(o)

    return kernel


@functools.partial(jax.jit, static_argnames=("seq_len", "hidden_dims", "vocab_size"))
def cnn_generator_forward(latent, objectives, params, *, seq_len, hidden_dims, vocab_size):
    """Fused CNNGenerator forward. Returns PyTorch-layout (B, vocab_size, seq_len) f32."""
    B = latent.shape[0]
    H0, H1 = hidden_dims
    L, V = seq_len, vocab_size

    wfc = params["w_fc"]
    NT, D, LTH0 = wfc.shape
    assert LTH0 % H0 == 0
    LT = LTH0 // H0
    assert NT * LT == L, (NT, LT, L)
    VPAD = params["w2"].shape[-1]

    # Merge [objectives | latent] once in the wrapper; keep the MXU operand bf16.
    x = jnp.concatenate([objectives, latent], axis=-1).astype(jnp.bfloat16)   # (B, D)
    assert x.shape == (B, D)

    kernel = _make_kernel(B, LT, H0, H1, B * L)

    def stream_pass0(p, t):
        # pass 0: stream tile t; pass 1: stay pinned on the last tile (no re-DMA).
        return (t + p * (NT - 1 - t), 0, 0)

    grid_spec = pltpu.PrefetchScalarGridSpec(
        num_scalar_prefetch=0,
        grid=(2, NT),                                               # (pass, sequence tile)
        in_specs=[
            pl.BlockSpec((B, D), lambda p, t: (0, 0)),              # x = [obj | lat], resident
            pl.BlockSpec((1, D, LTH0), stream_pass0),               # fc1 weight tile (bf16)
            pl.BlockSpec((1, 1, LTH0), stream_pass0),               # bn1 gamma
            pl.BlockSpec((1, 1, LTH0), stream_pass0),               # bn1 beta
            pl.BlockSpec((H0, H1), lambda p, t: (0, 0)),            # deconv1 weight (bf16)
            pl.BlockSpec((1, H1), lambda p, t: (0, 0)),             # bn2 gamma
            pl.BlockSpec((1, H1), lambda p, t: (0, 0)),             # bn2 beta
            pl.BlockSpec((H1, VPAD), lambda p, t: (0, 0)),          # deconv2 weight (bf16, padded)
        ],
        # Pass 0 is pinned to block 0 (never written there -> never flushed mid-pass);
        # every output block is written to HBM exactly once, in pass 1.
        out_specs=pl.BlockSpec((1, LT * B, VPAD), lambda p, t: (p * t, 0, 0)),
        scratch_shapes=[
            pltpu.VMEM((1, H1), jnp.float32),                       # BN2 sum
            pltpu.VMEM((1, H1), jnp.float32),                       # BN2 sum of squares
            pltpu.VMEM((NT, LT * B, H1), jnp.bfloat16),             # activation cache
        ],
    )

    # Generation-aware VMEM budget: working set (double-buffered streamed operands +
    # resident weights + cache + output block) with headroom, capped below the physical
    # VMEM of the current generation (128 MiB on v5e/v6e, 64 MiB on v7x).
    est = (2 * (D * LTH0 * 2 + 2 * LTH0 * 4)      # streamed fc1 W + bn1 vectors (x2 buffers)
           + B * D * 2 + H0 * H1 * 2 + H1 * VPAD * 2 + 4 * H1 * 4
           + NT * LT * B * H1 * 2                  # bf16 activation cache
           + 2 * LT * B * VPAD * 4                 # output block (x2 buffers)
           + 2 * H1 * 4)
    try:
        vmem_cap = int(pltpu.get_tpu_info().vmem_capacity_bytes)
    except Exception:
        vmem_cap = 64 * 1024 * 1024
    vmem_limit = int(min(max(2 * est + (4 << 20), 16 << 20), (vmem_cap * 7) // 8))

    out = pl.pallas_call(
        kernel,
        out_shape=jax.ShapeDtypeStruct((NT, LT * B, VPAD), jnp.float32),
        grid_spec=grid_spec,
        compiler_params=pltpu.CompilerParams(
            dimension_semantics=("arbitrary", "arbitrary"),   # stats/cache carried in scratch
            vmem_limit_bytes=vmem_limit,
        ),
    )(x, params["w_fc"], params["g1"], params["be1"], params["w1"],
      params["g2"], params["be2"], params["w2"])

    # (NT, LT*B, VPAD) -> (NT, LT, B, VPAD) -> slice vocab pad -> (B, V, L); fused under jit.
    out = out.reshape(NT, LT, B, VPAD)[..., :V]
    return out.transpose(2, 3, 0, 1).reshape(B, V, L)


def init_params(key, *, input_dim, objective_dim, seq_len, hidden_dims, vocab_size,
                l_tile=None):
    """Synthetic parameters in torch layout + the pre-tiled / lane-padded kernel layout."""
    H0, H1 = hidden_dims
    L, V = seq_len, vocab_size
    Dobj, Dlat = objective_dim, input_dim
    D = Dobj + Dlat
    F = L * H0
    VPAD = LANE * ((V + LANE - 1) // LANE)
    lt = _choose_l_tile(L, H0, D, l_tile)
    nt = L // lt

    ks = jax.random.split(key, 7)
    # fc1 (torch Linear): weight (F, D) ~ N(0,1), bias zeros; feature f = h0*L + l,
    # column order d = [objectives | latent] (matches torch.cat order).
    w_fc = jax.random.normal(ks[0], (F, D), jnp.float32)
    b_fc = jnp.zeros((F,), jnp.float32)
    g1 = jax.random.uniform(ks[1], (F,), jnp.float32, 0.5, 1.5)
    be1 = jax.random.uniform(ks[2], (F,), jnp.float32, -0.1, 0.1)
    a1 = (6.0 / (H0 + H1)) ** 0.5
    w1 = jax.random.uniform(ks[3], (H0, H1), jnp.float32, -a1, a1)       # deconv1 (k=1)
    g2 = jax.random.uniform(ks[4], (H1,), jnp.float32, 0.5, 1.5)
    be2 = jax.random.uniform(ks[5], (H1,), jnp.float32, -0.1, 0.1)
    a2 = (6.0 / (H1 + V)) ** 0.5
    w2 = jax.random.uniform(ks[6], (H1, V), jnp.float32, -a2, a2)        # deconv2 (k=1)

    torch_params = dict(w_fc=w_fc, b_fc=b_fc, g1=g1, be1=be1, w1=w1, g2=g2, be2=be2, w2=w2)

    # Kernel layout:
    #   fc1 weight per tile as (nt, D, lt*H0), lane-dense, column index = l_local*H0 + h0;
    #   bn1 vectors per tile as (nt, 1, lt*H0) in the same column order;
    #   MXU weights in bf16; deconv2 zero-padded to a lane-dense VPAD vocab axis.
    #   (fc1 bias is not shipped to the kernel: it cancels under training-mode BN1.)
    w_x = w_fc.reshape(H0, L, D).transpose(1, 0, 2)            # (L, H0, D)   [l, h0, d]
    w_x = w_x.reshape(nt, lt, H0, D).transpose(0, 3, 1, 2)     # (nt, D, lt, H0)
    w_x = w_x.reshape(nt, D, lt * H0).astype(jnp.bfloat16)

    def feat_rows(v):   # (F,) torch order (f = h0*L + l) -> (nt, 1, lt*H0), col = l*H0+h0
        return v.reshape(H0, L).T.reshape(nt, 1, lt * H0)

    kernel_params = dict(
        w_fc=w_x,
        g1=feat_rows(g1),
        be1=feat_rows(be1),
        w1=w1.astype(jnp.bfloat16),
        g2=g2.reshape(1, H1),
        be2=be2.reshape(1, H1),
        w2=jnp.pad(w2, ((0, 0), (0, VPAD - V))).astype(jnp.bfloat16),
    )
    return kernel_params, torch_params


def _reference_forward(latent, objectives, pt, *, seq_len, hidden_dims, vocab_size):
    """Pure-JAX f32 reference mirroring the torch module (training-mode BatchNorm)."""
    H0, H1 = hidden_dims
    L = seq_len
    B = latent.shape[0]
    x = jnp.concatenate([objectives, latent], axis=-1)
    h = x @ pt["w_fc"].T + pt["b_fc"]
    mu = h.mean(0)
    var = ((h - mu) ** 2).mean(0)
    h = (h - mu) / jnp.sqrt(var + EPS) * pt["g1"] + pt["be1"]
    z = h.reshape(B, H0, L)                                   # x.view(-1, H0, L)
    y = jnp.einsum('bhl,hk->bkl', z, pt["w1"])                # ConvTranspose1d k=1
    y = jnp.where(y > 0, y, NEG_SLOPE * y)
    mu2 = y.mean(axis=(0, 2))[None, :, None]
    var2 = ((y - mu2) ** 2).mean(axis=(0, 2))[None, :, None]
    y = (y - mu2) / jnp.sqrt(var2 + EPS) * pt["g2"][None, :, None] + pt["be2"][None, :, None]
    o = jnp.einsum('bkl,kv->bvl', y, pt["w2"])                # ConvTranspose1d k=1
    return jnp.where(o > 0, o, NEG_SLOPE * o)


if __name__ == "__main__":
    B = 8
    input_dim = 16
    objective_dim = 8
    seq_len = 8
    vocab_size = 16
    hidden_dims = (32, 16)

    key = jax.random.PRNGKey(0)
    k_lat, k_obj, k_par = jax.random.split(key, 3)
    latent = jax.random.normal(k_lat, (B, input_dim), jnp.float32)
    objectives = jax.random.normal(k_obj, (B, objective_dim), jnp.float32)

    ref = None
    # Exercise both the single-tile (NT=1, auto tile) and multi-tile (NT=2) paths.
    for l_tile in (None, 4):
        kparams, tparams = init_params(
            k_par, input_dim=input_dim, objective_dim=objective_dim, seq_len=seq_len,
            hidden_dims=hidden_dims, vocab_size=vocab_size, l_tile=l_tile)

        out = cnn_generator_forward(latent, objectives, kparams,
                                    seq_len=seq_len, hidden_dims=hidden_dims,
                                    vocab_size=vocab_size)
        out = jax.block_until_ready(out)

        assert out.shape == (B, vocab_size, seq_len), out.shape
        assert bool(jnp.all(jnp.isfinite(out)))

        if ref is None:
            ref = _reference_forward(latent, objectives, tparams, seq_len=seq_len,
                                     hidden_dims=hidden_dims, vocab_size=vocab_size)
        rel_err = float(jnp.linalg.norm(out - ref) / (jnp.linalg.norm(ref) + 1e-12))
        assert rel_err < 0.05, f"relative L2 error vs f32 reference too large: {rel_err}"

    print("KERNEL_OK")
</pallas_src>

<mosaic_0001>
module attributes {stable_mosaic.version = 11 : i64} {
  func.func @kernel(%arg0: i32, %arg1: i32, %arg2: memref<8x24xbf16, #tpu.memory_space<vmem>>, %arg3: memref<1x24x256xbf16, #tpu.memory_space<vmem>>, %arg4: memref<1x1x256xf32, #tpu.memory_space<vmem>>, %arg5: memref<1x1x256xf32, #tpu.memory_space<vmem>>, %arg6: memref<32x16xbf16, #tpu.memory_space<vmem>>, %arg7: memref<1x16xf32, #tpu.memory_space<vmem>>, %arg8: memref<1x16xf32, #tpu.memory_space<vmem>>, %arg9: memref<16x128xbf16, #tpu.memory_space<vmem>>, %arg10: memref<1x64x128xf32, #tpu.memory_space<vmem>>, %arg11: memref<1x16xf32, #tpu.memory_space<vmem>>, %arg12: memref<1x16xf32, #tpu.memory_space<vmem>>, %arg13: memref<1x64x16xbf16, #tpu.memory_space<vmem>>) attributes {dimension_semantics = [#tpu.dimension_semantics<arbitrary>, #tpu.dimension_semantics<arbitrary>], iteration_bounds = array<i64: 2, 1>, scalar_prefetch = 0 : i64, scratch_operands = 3 : i64, tpu.core_type = #tpu.core_type<tc>, window_params = [{pipeline_mode = #tpu.pipeline_mode<synchronous>, transform_indices = @transform_0, window_bounds = array<i64: 8, 24>}, {transform_indices = @transform_1, window_bounds = array<i64: 1, 24, 256>}, {transform_indices = @transform_2, window_bounds = array<i64: 1, 1, 256>}, {transform_indices = @transform_3, window_bounds = array<i64: 1, 1, 256>}, {pipeline_mode = #tpu.pipeline_mode<synchronous>, transform_indices = @transform_4, window_bounds = array<i64: 32, 16>}, {pipeline_mode = #tpu.pipeline_mode<synchronous>, transform_indices = @transform_5, window_bounds = array<i64: 1, 16>}, {pipeline_mode = #tpu.pipeline_mode<synchronous>, transform_indices = @transform_6, window_bounds = array<i64: 1, 16>}, {pipeline_mode = #tpu.pipeline_mode<synchronous>, transform_indices = @transform_7, window_bounds = array<i64: 16, 128>}, {transform_indices = @transform_8, window_bounds = array<i64: 1, 64, 128>}]} {
    %c0_i32 = arith.constant 0 : i32
    %0 = arith.cmpi eq, %arg0, %c0_i32 : i32
    %c0_i32_0 = arith.constant 0 : i32
    %1 = arith.cmpi eq, %arg1, %c0_i32_0 : i32
    %2 = arith.andi %0, %1 : i1
    %3 = arith.extui %2 : i1 to i32
    %c0_i32_1 = arith.constant 0 : i32
    %4 = arith.cmpi ne, %3, %c0_i32_1 : i32
    scf.if %4 {
      %cst = arith.constant 0.000000e+00 : f32
      %11 = vector.broadcast %cst : f32 to vector<1x16xf32>
      %c0 = arith.constant 0 : index
      %c0_5 = arith.constant 0 : index
      %12 = vector.load %arg11[%c0, %c0_5] : memref<1x16xf32, #tpu.memory_space<vmem>>, vector<1x16xf32>
      tpu.vector_store %arg11[%c0, %c0_5], %11 {strides = array<i32>} : memref<1x16xf32, #tpu.memory_space<vmem>>, vector<1x16xf32>,
      %cst_6 = arith.constant 0.000000e+00 : f32
      %13 = vector.broadcast %cst_6 : f32 to vector<1x16xf32>
      %c0_7 = arith.constant 0 : index
      %c0_8 = arith.constant 0 : index
      %14 = vector.load %arg12[%c0_7, %c0_8] : memref<1x16xf32, #tpu.memory_space<vmem>>, vector<1x16xf32>
      tpu.vector_store %arg12[%c0_7, %c0_8], %13 {strides = array<i32>} : memref<1x16xf32, #tpu.memory_space<vmem>>, vector<1x16xf32>,
    } else {
    }
    %c0_i32_2 = arith.constant 0 : i32
    %5 = arith.cmpi eq, %arg0, %c0_i32_2 : i32
    %6 = arith.extui %5 : i1 to i32
    %c0_i32_3 = arith.constant 0 : i32
    %7 = arith.cmpi ne, %6, %c0_i32_3 : i32
    scf.if %7 {
      %c0 = arith.constant 0 : index
      %c0_5 = arith.constant 0 : index
      %11 = vector.load %arg2[%c0, %c0_5] : memref<8x24xbf16, #tpu.memory_space<vmem>>, vector<8x24xbf16>
      %c0_6 = arith.constant 0 : index
      %c0_7 = arith.constant 0 : index
      %c0_8 = arith.constant 0 : index
      %12 = vector.load %arg3[%c0_6, %c0_7, %c0_8] : memref<1x24x256xbf16, #tpu.memory_space<vmem>>, vector<1x24x256xbf16>
      %13 = vector.shape_cast %12 : vector<1x24x256xbf16> to vector<24x256xbf16>
      %cst = arith.constant dense<0.000000e+00> : vector<8x256xf32>
      %14 = tpu.matmul %11, %13, %cst {dimension_numbers = #tpu.dot_dimension_numbers<[1], [0], [0], [1], [0, 0, 1, 1], [], []>} : vector<8x24xbf16>, vector<24x256xbf16>, vector<8x256xf32> -> vector<8x256xf32>
      %cst_9 = arith.constant dense<0.000000e+00> : vector<256xf32>
      %15 = vector.multi_reduction <add>, %14, %cst_9 [0] : vector<8x256xf32> to vector<256xf32>
      %16 = vector.shape_cast %15 : vector<256xf32> to vector<1x256xf32>
      %cst_10 = arith.constant 8.000000e+00 : f32
      %17 = vector.broadcast %cst_10 : f32 to vector<1x256xf32>
      %18 = arith.divf %16, %17 : vector<1x256xf32>
      %19 = arith.mulf %14, %14 : vector<8x256xf32>
      %cst_11 = arith.constant dense<0.000000e+00> : vector<256xf32>
      %20 = vector.multi_reduction <add>, %19, %cst_11 [0] : vector<8x256xf32> to vector<256xf32>
      %21 = vector.shape_cast %20 : vector<256xf32> to vector<1x256xf32>
      %cst_12 = arith.constant 8.000000e+00 : f32
      %22 = vector.broadcast %cst_12 : f32 to vector<1x256xf32>
      %23 = arith.divf %21, %22 : vector<1x256xf32>
      %24 = arith.mulf %18, %18 : vector<1x256xf32>
      %25 = arith.subf %23, %24 : vector<1x256xf32>
      %cst_13 = arith.constant 0.000000e+00 : f32
      %26 = vector.broadcast %cst_13 : f32 to vector<1x256xf32>
      %27 = arith.maximumf %25, %26 : vector<1x256xf32>
      %c0_14 = arith.constant 0 : index
      %c0_15 = arith.constant 0 : index
      %c0_16 = arith.constant 0 : index
      %28 = vector.load %arg4[%c0_14, %c0_15, %c0_16] : memref<1x1x256xf32, #tpu.memory_space<vmem>>, vector<1x1x256xf32>
      %29 = vector.shape_cast %28 : vector<1x1x256xf32> to vector<1x256xf32>
      %cst_17 = arith.constant 9.99999974E-6 : f32
      %30 = vector.broadcast %cst_17 : f32 to vector<1x256xf32>
      %31 = arith.addf %27, %30 : vector<1x256xf32>
      %32 = math.rsqrt %31 : vector<1x256xf32>
      %33 = arith.mulf %29, %32 : vector<1x256xf32>
      %c0_18 = arith.constant 0 : index
      %c0_19 = arith.constant 0 : index
      %c0_20 = arith.constant 0 : index
      %34 = vector.load %arg5[%c0_18, %c0_19, %c0_20] : memref<1x1x256xf32, #tpu.memory_space<vmem>>, vector<1x1x256xf32>
      %35 = vector.shape_cast %34 : vector<1x1x256xf32> to vector<1x256xf32>
      %36 = arith.mulf %18, %33 : vector<1x256xf32>
      %37 = arith.subf %35, %36 : vector<1x256xf32>
      %38 = vector.broadcast %33 : vector<1x256xf32> to vector<8x256xf32>
      %39 = arith.mulf %14, %38 : vector<8x256xf32>
      %40 = vector.broadcast %37 : vector<1x256xf32> to vector<8x256xf32>
      %41 = arith.addf %39, %40 : vector<8x256xf32>
      %42 = vector.extract_strided_slice %41 {offsets = [0, 0], sizes = [8, 32], strides = [1, 1]} : vector<8x256xf32> to vector<8x32xf32>
      %43 = vector.extract_strided_slice %41 {offsets = [0, 32], sizes = [8, 32], strides = [1, 1]} : vector<8x256xf32> to vector<8x32xf32>
      %44 = vector.extract_strided_slice %41 {offsets = [0, 64], sizes = [8, 32], strides = [1, 1]} : vector<8x256xf32> to vector<8x32xf32>
      %45 = vector.extract_strided_slice %41 {offsets = [0, 96], sizes = [8, 32], strides = [1, 1]} : vector<8x256xf32> to vector<8x32xf32>
      %46 = vector.extract_strided_slice %41 {offsets = [0, 128], sizes = [8, 32], strides = [1, 1]} : vector<8x256xf32> to vector<8x32xf32>
      %47 = vector.extract_strided_slice %41 {offsets = [0, 160], sizes = [8, 32], strides = [1, 1]} : vector<8x256xf32> to vector<8x32xf32>
      %48 = vector.extract_strided_slice %41 {offsets = [0, 192], sizes = [8, 32], strides = [1, 1]} : vector<8x256xf32> to vector<8x32xf32>
      %49 = vector.extract_strided_slice %41 {offsets = [0, 224], sizes = [8, 32], strides = [1, 1]} : vector<8x256xf32> to vector<8x32xf32>
      %50 = tpu.concatenate %42, %43, %44, %45, %46, %47, %48, %49 in 0 : vector<8x32xf32>, vector<8x32xf32>, vector<8x32xf32>, vector<8x32xf32>, vector<8x32xf32>, vector<8x32xf32>, vector<8x32xf32>, vector<8x32xf32> -> vector<64x32xf32>
      %51 = arith.truncf %50 : vector<64x32xf32> to vector<64x32xbf16>
      %c0_21 = arith.constant 0 : index
      %c0_22 = arith.constant 0 : index
      %52 = vector.load %arg6[%c0_21, %c0_22] : memref<32x16xbf16, #tpu.memory_space<vmem>>, vector<32x16xbf16>
      %cst_23 = arith.constant dense<0.000000e+00> : vector<64x16xf32>
      %53 = tpu.matmul %51, %52, %cst_23 {dimension_numbers = #tpu.dot_dimension_numbers<[1], [0], [0], [1], [0, 0, 1, 1], [], []>} : vector<64x32xbf16>, vector<32x16xbf16>, vector<64x16xf32> -> vector<64x16xf32>
      %cst_24 = arith.constant 0.000000e+00 : f32
      %54 = vector.broadcast %cst_24 : f32 to vector<64x16xf32>
      %55 = arith.cmpf ogt, %53, %54 : vector<64x16xf32>
      %cst_25 = arith.constant 0.00999999977 : f32
      %56 = vector.broadcast %cst_25 : f32 to vector<64x16xf32>
      %57 = arith.mulf %56, %53 : vector<64x16xf32>
      %58 = arith.select %55, %53, %57 : vector<64x16xi1>, vector<64x16xf32>
      %c0_26 = arith.constant 0 : index
      %c0_27 = arith.constant 0 : index
      %59 = vector.load %arg11[%c0_26, %c0_27] : memref<1x16xf32, #tpu.memory_space<vmem>>, vector<1x16xf32>
      %cst_28 = arith.constant dense<0.000000e+00> : vector<16xf32>
      %60 = vector.multi_reduction <add>, %58, %cst_28 [0] : vector<64x16xf32> to vector<16xf32>
      %61 = vector.shape_cast %60 : vector<16xf32> to vector<1x16xf32>
      %62 = arith.addf %59, %61 : vector<1x16xf32>
      %c0_29 = arith.constant 0 : index
      %c0_30 = arith.constant 0 : index
      %63 = vector.load %arg11[%c0_29, %c0_30] : memref<1x16xf32, #tpu.memory_space<vmem>>, vector<1x16xf32>
      tpu.vector_store %arg11[%c0_29, %c0_30], %62 {strides = array<i32>} : memref<1x16xf32, #tpu.memory_space<vmem>>, vector<1x16xf32>,
      %c0_31 = arith.constant 0 : index
      %c0_32 = arith.constant 0 : index
      %64 = vector.load %arg12[%c0_31, %c0_32] : memref<1x16xf32, #tpu.memory_space<vmem>>, vector<1x16xf32>
      %65 = arith.mulf %58, %58 : vector<64x16xf32>
      %cst_33 = arith.constant dense<0.000000e+00> : vector<16xf32>
      %66 = vector.multi_reduction <add>, %65, %cst_33 [0] : vector<64x16xf32> to vector<16xf32>
      %67 = vector.shape_cast %66 : vector<16xf32> to vector<1x16xf32>
      %68 = arith.addf %64, %67 : vector<1x16xf32>
      %c0_34 = arith.constant 0 : index
      %c0_35 = arith.constant 0 : index
      %69 = vector.load %arg12[%c0_34, %c0_35] : memref<1x16xf32, #tpu.memory_space<vmem>>, vector<1x16xf32>
      tpu.vector_store %arg12[%c0_34, %c0_35], %68 {strides = array<i32>} : memref<1x16xf32, #tpu.memory_space<vmem>>, vector<1x16xf32>,
      %70 = arith.truncf %58 : vector<64x16xf32> to vector<64x16xbf16>
      %71 = arith.index_cast %arg1 : i32 to index
      %c0_36 = arith.constant 0 : index
      %c0_37 = arith.constant 0 : index
      %72 = vector.load %arg13[%71, %c0_36, %c0_37] : memref<1x64x16xbf16, #tpu.memory_space<vmem>>, vector<1x64x16xbf16>
      %73 = vector.shape_cast %72 : vector<1x64x16xbf16> to vector<64x16xbf16>
      %74 = vector.shape_cast %70 : vector<64x16xbf16> to vector<1x64x16xbf16>
      tpu.vector_store %arg13[%71, %c0_36, %c0_37], %74 {strides = array<i32>} : memref<1x64x16xbf16, #tpu.memory_space<vmem>>, vector<1x64x16xbf16>,
    } else {
    }
    %c1_i32 = arith.constant 1 : i32
    %8 = arith.cmpi eq, %arg0, %c1_i32 : i32
    %9 = arith.extui %8 : i1 to i32
    %c0_i32_4 = arith.constant 0 : i32
    %10 = arith.cmpi ne, %9, %c0_i32_4 : i32
    scf.if %10 {
      %c0 = arith.constant 0 : index
      %c0_5 = arith.constant 0 : index
      %11 = vector.load %arg11[%c0, %c0_5] : memref<1x16xf32, #tpu.memory_space<vmem>>, vector<1x16xf32>
      %cst = arith.constant 1.562500e-02 : f32
      %12 = vector.broadcast %cst : f32 to vector<1x16xf32>
      %13 = arith.mulf %11, %12 : vector<1x16xf32>
      %c0_6 = arith.constant 0 : index
      %c0_7 = arith.constant 0 : index
      %14 = vector.load %arg12[%c0_6, %c0_7] : memref<1x16xf32, #tpu.memory_space<vmem>>, vector<1x16xf32>
      %cst_8 = arith.constant 1.562500e-02 : f32
      %15 = vector.broadcast %cst_8 : f32 to vector<1x16xf32>
      %16 = arith.mulf %14, %15 : vector<1x16xf32>
      %17 = arith.mulf %13, %13 : vector<1x16xf32>
      %18 = arith.subf %16, %17 : vector<1x16xf32>
      %cst_9 = arith.constant 0.000000e+00 : f32
      %19 = vector.broadcast %cst_9 : f32 to vector<1x16xf32>
      %20 = arith.maximumf %18, %19 : vector<1x16xf32>
      %c0_10 = arith.constant 0 : index
      %c0_11 = arith.constant 0 : index
      %21 = vector.load %arg7[%c0_10, %c0_11] : memref<1x16xf32, #tpu.memory_space<vmem>>, vector<1x16xf32>
      %cst_12 = arith.constant 9.99999974E-6 : f32
      %22 = vector.broadcast %cst_12 : f32 to vector<1x16xf32>
      %23 = arith.addf %20, %22 : vector<1x16xf32>
      %24 = math.rsqrt %23 : vector<1x16xf32>
      %25 = arith.mulf %21, %24 : vector<1x16xf32>
      %c0_13 = arith.constant 0 : index
      %c0_14 = arith.constant 0 : index
      %26 = vector.load %arg8[%c0_13, %c0_14] : memref<1x16xf32, #tpu.memory_space<vmem>>, vector<1x16xf32>
      %27 = arith.mulf %13, %25 : vector<1x16xf32>
      %28 = arith.subf %26, %27 : vector<1x16xf32>
      %29 = arith.index_cast %arg1 : i32 to index
      %c0_15 = arith.constant 0 : index
      %c0_16 = arith.constant 0 : index
      %30 = vector.load %arg13[%29, %c0_15, %c0_16] : memref<1x64x16xbf16, #tpu.memory_space<vmem>>, vector<1x64x16xbf16>
      %31 = vector.shape_cast %30 : vector<1x64x16xbf16> to vector<64x16xbf16>
      %32 = arith.extf %31 : vector<64x16xbf16> to vector<64x16xf32>
      %33 = vector.broadcast %25 : vector<1x16xf32> to vector<64x16xf32>
      %34 = arith.mulf %32, %33 : vector<64x16xf32>
      %35 = vector.broadcast %28 : vector<1x16xf32> to vector<64x16xf32>
      %36 = arith.addf %34, %35 : vector<64x16xf32>
      %37 = arith.truncf %36 : vector<64x16xf32> to vector<64x16xbf16>
      %c0_17 = arith.constant 0 : index
      %c0_18 = arith.constant 0 : index
      %38 = vector.load %arg9[%c0_17, %c0_18] : memref<16x128xbf16, #tpu.memory_space<vmem>>, vector<16x128xbf16>
      %cst_19 = arith.constant dense<0.000000e+00> : vector<64x128xf32>
      %39 = tpu.matmul %37, %38, %cst_19 {dimension_numbers = #tpu.dot_dimension_numbers<[1], [0], [0], [1], [0, 0, 1, 1], [], []>} : vector<64x16xbf16>, vector<16x128xbf16>, vector<64x128xf32> -> vector<64x128xf32>
      %cst_20 = arith.constant 0.000000e+00 : f32
      %40 = vector.broadcast %cst_20 : f32 to vector<64x128xf32>
      %41 = arith.cmpf ogt, %39, %40 : vector<64x128xf32>
      %cst_21 = arith.constant 0.00999999977 : f32
      %42 = vector.broadcast %cst_21 : f32 to vector<64x128xf32>
      %43 = arith.mulf %42, %39 : vector<64x128xf32>
      %44 = arith.select %41, %39, %43 : vector<64x128xi1>, vector<64x128xf32>
      %c0_22 = arith.constant 0 : index
      %c0_23 = arith.constant 0 : index
      %c0_24 = arith.constant 0 : index
      %45 = vector.load %arg10[%c0_22, %c0_23, %c0_24] : memref<1x64x128xf32, #tpu.memory_space<vmem>>, vector<1x64x128xf32>
      %46 = vector.shape_cast %45 : vector<1x64x128xf32> to vector<64x128xf32>
      %47 = vector.shape_cast %44 : vector<64x128xf32> to vector<1x64x128xf32>
      tpu.vector_store %arg10[%c0_22, %c0_23, %c0_24], %47 {strides = array<i32>} : memref<1x64x128xf32, #tpu.memory_space<vmem>>, vector<1x64x128xf32>,
    } else {
    }
    return
  }
  func.func @transform_0(%arg0: i32, %arg1: i32) -> (i32, i32) {
    %c0_i32 = arith.constant 0 : i32
    %c0_i32_0 = arith.constant 0 : i32
    %c0_i32_1 = arith.constant 0 : i32
    return %c0_i32, %c0_i32_0 : i32, i32
  }
  func.func @transform_1(%arg0: i32, %arg1: i32) -> (i32, i32, i32) {
    %c0_i32 = arith.constant 0 : i32
    %0 = arith.subi %c0_i32, %arg1 : i32
    %1 = arith.muli %arg0, %0 : i32
    %2 = arith.addi %arg1, %1 : i32
    %c0_i32_0 = arith.constant 0 : i32
    %c0_i32_1 = arith.constant 0 : i32
    %c0_i32_2 = arith.constant 0 : i32
    return %2, %c0_i32_0, %c0_i32_1 : i32, i32, i32
  }
  func.func @transform_2(%arg0: i32, %arg1: i32) -> (i32, i32, i32) {
    %c0_i32 = arith.constant 0 : i32
    %0 = arith.subi %c0_i32, %arg1 : i32
    %1 = arith.muli %arg0, %0 : i32
    %2 = arith.addi %arg1, %1 : i32
    %c0_i32_0 = arith.constant 0 : i32
    %c0_i32_1 = arith.constant 0 : i32
    %c0_i32_2 = arith.constant 0 : i32
    return %2, %c0_i32_0, %c0_i32_1 : i32, i32, i32
  }
  func.func @transform_3(%arg0: i32, %arg1: i32) -> (i32, i32, i32) {
    %c0_i32 = arith.constant 0 : i32
    %0 = arith.subi %c0_i32, %arg1 : i32
    %1 = arith.muli %arg0, %0 : i32
    %2 = arith.addi %arg1, %1 : i32
    %c0_i32_0 = arith.constant 0 : i32
    %c0_i32_1 = arith.constant 0 : i32
    %c0_i32_2 = arith.constant 0 : i32
    return %2, %c0_i32_0, %c0_i32_1 : i32, i32, i32
  }
  func.func @transform_4(%arg0: i32, %arg1: i32) -> (i32, i32) {
    %c0_i32 = arith.constant 0 : i32
    %c0_i32_0 = arith.constant 0 : i32
    %c0_i32_1 = arith.constant 0 : i32
    return %c0_i32, %c0_i32_0 : i32, i32
  }
  func.func @transform_5(%arg0: i32, %arg1: i32) -> (i32, i32) {
    %c0_i32 = arith.constant 0 : i32
    %c0_i32_0 = arith.constant 0 : i32
    %c0_i32_1 = arith.constant 0 : i32
    return %c0_i32, %c0_i32_0 : i32, i32
  }
  func.func @transform_6(%arg0: i32, %arg1: i32) -> (i32, i32) {
    %c0_i32 = arith.constant 0 : i32
    %c0_i32_0 = arith.constant 0 : i32
    %c0_i32_1 = arith.constant 0 : i32
    return %c0_i32, %c0_i32_0 : i32, i32
  }
  func.func @transform_7(%arg0: i32, %arg1: i32) -> (i32, i32) {
    %c0_i32 = arith.constant 0 : i32
    %c0_i32_0 = arith.constant 0 : i32
    %c0_i32_1 = arith.constant 0 : i32
    return %c0_i32, %c0_i32_0 : i32, i32
  }
  func.func @transform_8(%arg0: i32, %arg1: i32) -> (i32, i32, i32) {
    %0 = arith.muli %arg0, %arg1 : i32
    %c0_i32 = arith.constant 0 : i32
    %c0_i32_0 = arith.constant 0 : i32
    %c0_i32_1 = arith.constant 0 : i32
    return %0, %c0_i32, %c0_i32_0 : i32, i32, i32
  }
}

</mosaic_0001>

<bundles_post_ra>
// kernel: cnn_generator_forward.1
= control target key start
LH: loop header
LB: loop body
LE: loop exit
PB: predicated region body
PF: predicated region fallthrough
CT: control target
= control target key end

     0   :  { %s1361_s27 = smov 0   ;;  %s1363_s28 = smov 0   ;;  %s1492_s0 = inlined_call_operand.vmem [shape: bf16[8,24], index: 0, kind: input, shape index: {}]   ;;  %s1493_s1 = inlined_call_operand.vmem [shape: bf16[1,24,256], index: 1, kind: input, shape index: {}]   ;;  %s1494_s2 = inlined_call_operand.vmem [shape: f32[1,1,256], index: 2, kind: input, shape index: {}]   ;;  %s1495_s3 = inlined_call_operand.vmem [shape: f32[1,1,256], index: 3, kind: input, shape index: {}]   ;;  %s1496_s4 = inlined_call_operand.vmem [shape: bf16[32,16], index: 4, kind: input, shape index: {}]   ;;  %s1497_s5 = inlined_call_operand.vmem [shape: f32[1,16], index: 5, kind: input, shape index: {}]   ;;  %s1498_s6 = inlined_call_operand.vmem [shape: f32[1,16], index: 6, kind: input, shape index: {}]   ;;  %s1499_s7 = inlined_call_operand.vmem [shape: bf16[16,128], index: 7, kind: input, shape index: {}]   ;;  %s1500_s8 = inlined_call_operand.vmem [shape: f32[1,64,128], index: 8, kind: output, shape index: {}]  }
   0x1   :  { %s1365_s29 = smov 0  }
   0x2 LB: > { %s30_s30 = sadd.s32 1, %s1304_s28  ;;  %p1146_p0 = scmp.ge.s32.totalorder %s1308_s29, 1  ;;  %s1308_s29 = sphi %s1365_s29, %s18_s29   ;;  %s1304_s28 = sphi %s1363_s28, %s1502_s28   ;;  %s1300_s27 = sphi %s1361_s27, %s1501_s27  }
   0x3   : > { %p32_p1 = scmp.ge.s32.totalorder %s30_s30, 2  ;;  %p330_p2 = scmp.lt.s32.totalorder %s1308_s29, 3 }
   0x5   : > { %s1504_s30 = smov (%p32_p1, %s30_s30), 0  ;;  %p331_p3 = pnand %p1146_p0, %p330_p2 }
   0x6   : > { %p421_p4 = scmp.eq.s32.totalorder (!%p331_p3), %s1300_s27, 0 }
   0x7   : > { %334 = sbr.rel (%p331_p3) target bundleno = 895 (0x37f), region = 52 }
   0xc   : > { %426 = sbr.rel (!%p421_p4) target bundleno = 17 (0x11), region = 56  ;;  %vm427_vm0 = vcmask (%p421_p4), 122880   ;;  %v1310_v0 = vmov (%p421_p4), 0.0  }
   0xd   : > { %428 = vst.msk [vmem:[#allocation2] sm:$0x1] (%p421_p4), %vm427_vm0, %v1310_v0  ;;  %429 = vst.msk [vmem:[#allocation3] sm:$0x1] (%p421_p4), %vm427_vm0, %v1310_v0 }
  0x11 PF: > { %p1148_p5 = scmp.ne.s32.totalorder %s1300_s27, 0 }
  0x12   : > { %s1313_s25 = smov (!%p1148_p5), 32   ;;  %s1314_s26 = smov (!%p1148_p5), 96  }
  0x13   : > { %432 = sbr.rel (%p1148_p5) target bundleno = 645 (0x285), region = 60  ;;  %s1315_s9 = smov (!%p1148_p5), 64  }
  0x18   : > { %v436_v1 = vld [vmem:[%s1493_s1 + $0x10] sm:$0xff]  ;;  %vm456_vm1 = vcmask 1043456   ;;  %v1274_v4 = vld [vmem:[%s1493_s1 + $0x4] ss:$8 sps:$4 sm:$0xff]   ;;  %v1311_v5 = vmov 0   ;;  %vm452_vm2 = vcmask 195584   ;;  %v552_v54 = vlaneseq }
  0x19   : > { %v1152_v2 = vcombine.high %v436_v1, %v436_v1  ;;  %v1151_v3 = vcombine.low %v436_v1, %v436_v1  ;;  %495 = vmatprep.mubr.bf16.mxu0 %v1311_v5  ;;  %v1276_v7 = vld [vmem:[%s1493_s1] ss:$8 sps:$4 sm:$0xff]   ;;  %v1312_v52 = vmov 1966171168   ;;  %vm653_vm3 = vcmask 261120  }
  0x1a   : > { %v433_v8 = vld [vmem:[%s1492_s0] sm:$0xf]  ;;  %v1277_v9 = vld [vmem:[%s1496_s4 + $0x8] sm:$0xff]   ;;  %v550_v53 = vunpack.c.l.s4 %v1312_v52  ;;  %v553_v56 = vshrl.u32 %v552_v54, 7  ;;  %vm848_vm5 = vcmask 125952   ;;  %vm756_vm7 = vcmask 130048  }
  0x1b   : > { %1153 = vmatprep.subr.msk.bf16.mxu0 %vm456_vm1, %v1152_v2  ;;  %v458_v6 = vsel %vm456_vm1, %v1151_v3, 0  ;;  %1218 = vmatprep.subr.bf16.mxu1 %v1277_v9  ;;  %v541_v62 = vld [vmem:[%s1494_s2] sm:$0x3]  ;;  %vm779_vm14 = vcmask 122880  }
  0x1c   : > { %476 = vmatpush1.bf16.msra.mxu0 %v458_v6  ;;  %1219 = vmatpush3.bf16.msra.mxu1 %v1277_v9  ;;  %v551_v55 = vunpack.c.0.s8 %v550_v53  ;;  %v573_v0 = vsub.s32 1, %v553_v56  ;;  %v569_v1 = vsub.s32 0, %v553_v56 }
  0x1d   : > { %477 = vmatprep.subr.bf16.mxu0 %v1274_v4 }
  0x1e   : > { %v554_v58 = vsub.s32 %v551_v55, %v553_v56 }
  0x20   : > { %478 = vmatpush1.bf16.msra.mxu0 %v1276_v7  ;;  %v1278_v7 = vld [vmem:[%s1496_s4] sm:$0xff]  }
  0x21   : > { %1220 = vmatprep.subr.bf16.mxu1 %v1278_v7 }
  0x22   : > { %1221 = vmatpush3.bf16.msra.mxu1 %v1278_v7 }
  0x23   : > { %1154 = vmatmul.mubr.msk.bf16.vlgmr.msra.gmra.mxu0 %vm452_vm2, %v433_v8 }
  0xe3   : > { %v1398_v10 = vpop.f32.mrf.mxu0 }
  0xe4   : > { %v504_v11 = vrot.slane %v1398_v10, 4  ;;  %v519_v12 = vmul.f32 %v1398_v10, %v1398_v10 }
  0xe5   : > { %v1403_v13 = vpop.f32.mrf.mxu0 }
  0xe6   : > { %v505_v14 = vadd.f32 %v504_v11, %v1398_v10  ;;  %v521_v15 = vrot.slane %v519_v12, 4  ;;  %v510_v16 = vrot.slane %v1403_v13, 4  ;;  %v520_v17 = vmul.f32 %v1403_v13, %v1403_v13  ;;  %v565_v11 = vld [vmem:[%s1495_s3] sm:$0x3] }
  0xe7   : > { %v501_v18 = vpop.f32.mrf.mxu0 }
  0xe8   : > { %v506_v19 = vrot.slane %v505_v14, 2  ;;  %v522_v20 = vadd.f32 %v521_v15, %v519_v12  ;;  %v511_v21 = vadd.f32 %v510_v16, %v1403_v13  ;;  %v527_v22 = vrot.slane %v520_v17, 4 }
  0xe9   : > { %v502_v23 = vpop.f32.mrf.mxu0 }
  0xea   : > { %v507_v24 = vadd.f32 %v506_v19, %v505_v14  ;;  %v523_v25 = vrot.slane %v522_v20, 2  ;;  %v512_v26 = vrot.slane %v511_v21, 2  ;;  %v528_v27 = vadd.f32 %v527_v22, %v520_v17 }
  0xec   : > { %v508_v28 = vrot.slane %v507_v24, 1  ;;  %v524_v29 = vadd.f32 %v523_v25, %v522_v20  ;;  %v513_v30 = vadd.f32 %v512_v26, %v511_v21  ;;  %v529_v31 = vrot.slane %v528_v27, 2 }
  0xee   : > { %v509_v32 = vadd.f32 %v508_v28, %v507_v24  ;;  %v525_v33 = vrot.slane %v524_v29, 1  ;;  %v514_v34 = vrot.slane %v513_v30, 1  ;;  %v530_v35 = vadd.f32 %v529_v31, %v528_v27 }
  0xf0   : > { %v517_v36 = vmul.f32 0.125, %v509_v32  ;;  %v526_v37 = vadd.f32 %v525_v33, %v524_v29  ;;  %v515_v38 = vadd.f32 %v514_v34, %v513_v30  ;;  %v531_v39 = vrot.slane %v530_v35, 1 }
  0xf2   : > { %v533_v40 = vmul.f32 0.125, %v526_v37  ;;  %v535_v41 = vmul.f32 %v517_v36, %v517_v36  ;;  %v518_v42 = vmul.f32 0.125, %v515_v38  ;;  %v532_v43 = vadd.f32 %v531_v39, %v530_v35 }
  0xf4   : > { %v537_v44 = vsub.f32 %v533_v40, %v535_v41  ;;  %v534_v45 = vmul.f32 0.125, %v532_v43  ;;  %v536_v46 = vmul.f32 %v518_v42, %v518_v42 }
  0xf6   : > { %v539_v47 = vmax.f32 %v537_v44, 0.0  ;;  %v538_v48 = vsub.f32 %v534_v45, %v536_v46 }
  0xf8   : > { %v542_v49 = vadd.f32 1e-05, %v539_v47  ;;  %v540_v50 = vmax.f32 %v538_v48, 0.0 }
  0xfa   : > { %v543_v51 = vadd.f32 1e-05, %v540_v50  ;;  %1279 = vrsqrt.f32 %v542_v49 }
  0xfc   : > { %1281 = vrsqrt.f32 %v543_v51 }
 0x107   : > { %v1280_v57 = vpop.eup %1279 }
 0x109   : > { %v1282_v59 = vpop.eup %1281 }
 0x10a   : > { %v548_v60 = vcombine.low %v1280_v57, %v1282_v59 }
 0x10c   : > { %v555_v61 = vrot.slane %v548_v60, %v554_v58 }
 0x10e   : > { %v562_v63 = vrot.slane %v555_v61, %v554_v58 }
 0x110   : > { %v564_v2 = vmul.f32 %v562_v63, %v541_v62 }
 0x112   : > { %v574_v3 = vrot.slane %v564_v2, %v573_v0  ;;  %v570_v4 = vrot.slane %v564_v2, %v569_v1 }
 0x114   : > { %v578_v5 = vmul.f32 %v574_v3, %v518_v42  ;;  %v577_v6 = vmul.f32 %v570_v4, %v517_v36  ;;  %v598_v15 = vmul.f32 %v570_v4, %v1398_v10  ;;  %v599_v19 = vmul.f32 %v574_v3, %v1403_v13 }
 0x116   : > { %v581_v8 = vcombine.low %v577_v6, %v578_v5 }
 0x118   : > { %v588_v9 = vrot.slane %v581_v8, %v554_v58 }
 0x11a   : > { %v595_v12 = vrot.slane %v588_v9, %v554_v58 }
 0x11c   : > { %v597_v14 = vsub.f32 %v565_v11, %v595_v12 }
 0x11e   : > { %v604_v16 = vrot.slane %v597_v14, %v569_v1  ;;  %v608_v18 = vrot.slane %v597_v14, %v573_v0 }
 0x120   : > { %v611_v17 = vadd.f32 %v604_v16, %v598_v15  ;;  %v612_v20 = vadd.f32 %v608_v18, %v599_v19 }
 0x122   : > { %620 = vrot.lane.b32.xlu1 %v611_v17, %s1313_s25  ;;  %614 = vrot.lane.b32.xlu0 %v611_v17, %s1314_s26 }
 0x126   : > { %624 = vrot.lane.b32.xlu1 %v612_v20, %s1314_s26  ;;  %617 = vrot.lane.b32.xlu0 %v611_v17, %s1315_s9 }
 0x12a   : > { %630 = vrot.lane.b32.xlu1 %v612_v20, %s1313_s25  ;;  %627 = vrot.lane.b32.xlu0 %v612_v20, %s1315_s9 }
 0x194   : > { %v621_v21 = vpop.permute.xlu1 %620  ;;  %v615_v22 = vpop.permute.xlu0 %614 }
 0x195   : > { %v633_v23 = vpack.c.bf16 %v615_v22, %v611_v17 }
 0x197   : > { %1222 = vmatprep.mubr.msk.bf16.mxu1 %vm653_vm3, %v633_v23 }
 0x198   : > { %v625_v10 = vpop.permute.xlu1 %624  ;;  %v618_v24 = vpop.permute.xlu0 %617 }
 0x199   : > { %v635_v25 = vpack.c.bf16 %v625_v10, %v612_v20  ;;  %v634_v26 = vpack.c.bf16 %v621_v21, %v618_v24 }
 0x19b   : > { %1223 = vmatmul.mubr.msk.bf16.vlgmr.msra.gmra.mxu1 %vm653_vm3, %v634_v26 }
 0x19c   : > { %1226 = vmatprep.mubr.msk.bf16.mxu1 %vm653_vm3, %v635_v25  ;;  %v631_v13 = vpop.permute.xlu1 %630  ;;  %v628_v27 = vpop.permute.xlu0 %627 }
 0x19d   : > { %v636_v28 = vpack.c.bf16 %v631_v13, %v628_v27 }
 0x1a3   : > { %1227 = vmatmul.mubr.msk.bf16.gmra.mxu1 %vm653_vm3, %v636_v28 }
 0x25b   : > { %v1224_v29 = vpop.f32.mrf.mxu1 }
 0x25c   : > { %vm733_vm4 = vcmp.gt.f32.partialorder %v1224_v29, 0.0  ;;  %v741_v30 = vmul.f32 0.01, %v1224_v29 }
 0x25d   : > { %v700_v31 = vpop.f32.mrf.mxu1 }
 0x25e   : > { %v749_v32 = vsel %vm733_vm4, %v1224_v29, %v741_v30  ;;  %vm731_vm6 = vcmp.gt.f32.partialorder %v700_v31, 0.0  ;;  %v739_v33 = vmul.f32 0.01, %v700_v31 }
 0x25f   : > { %v1182_v34 = vpack.c.bf16 %v749_v32, %v749_v32  ;;  %v1225_v35 = vpop.f32.mrf.mxu1  ;;  %v760_v42 = vsel %vm756_vm7, %v749_v32, 0.0  ;;  %v784_v46 = vmul.f32 %v749_v32, %v749_v32 }
 0x260   : > { %v747_v36 = vsel %vm731_vm6, %v700_v31, %v739_v33  ;;  %vm734_vm8 = vcmp.gt.f32.partialorder %v1225_v35, 0.0  ;;  %v742_v37 = vmul.f32 0.01, %v1225_v35 }
 0x261   : > { %851 = vst.msk [vmem:[#allocation4 + $0x8] sm:$0xf] %vm848_vm5, %v1182_v34  ;;  %v1180_v38 = vpack.c.bf16 %v747_v36, %v747_v36  ;;  %v703_v39 = vpop.f32.mrf.mxu1  ;;  %v782_v43 = vmul.f32 %v747_v36, %v747_v36  ;;  %v757_v49 = vsel %vm756_vm7, %v747_v36, 0.0  ;;  %v793_v62 = vsel %vm756_vm7, %v784_v46, 0.0 }
 0x262   : > { %v750_v40 = vsel %vm734_vm8, %v1225_v35, %v742_v37  ;;  %vm732_vm9 = vcmp.gt.f32.partialorder %v703_v39, 0.0  ;;  %v740_v41 = vmul.f32 0.01, %v703_v39 }
 0x263   : > { %849 = vst.msk [vmem:[#allocation4] sm:$0xf] %vm848_vm5, %v1180_v38  ;;  %v1183_v44 = vpack.c.bf16 %v750_v40, %v750_v40  ;;  %v1228_v45 = vpop.f32.mrf.mxu1  ;;  %v790_v57 = vsel %vm756_vm7, %v782_v43, 0.0  ;;  %v785_v58 = vmul.f32 %v750_v40, %v750_v40  ;;  %v762_v2 = vsel %vm756_vm7, %v750_v40, 0.0 }
 0x264   : > { %v748_v47 = vsel %vm732_vm9, %v703_v39, %v740_v41  ;;  %vm737_vm10 = vcmp.gt.f32.partialorder %v1228_v45, 0.0  ;;  %v745_v48 = vmul.f32 0.01, %v1228_v45 }
 0x265   : > { %852 = vst.msk [vmem:[#allocation4 + $0xc] sm:$0xf] %vm848_vm5, %v1183_v44  ;;  %v758_v50 = vsel %vm756_vm7, %v748_v47, 0.0  ;;  %v783_v51 = vmul.f32 %v748_v47, %v748_v47  ;;  %v1181_v52 = vpack.c.bf16 %v748_v47, %v748_v47  ;;  %v716_v53 = vpop.f32.mrf.mxu1  ;;  %v795_v9 = vsel %vm756_vm7, %v785_v58, 0.0  ;;  %v755_v44 = vld [vmem:[#allocation2] sm:$0x1] }
 0x266   : > { %v759_v54 = vadd.f32 %v758_v50, %v757_v49  ;;  %v753_v55 = vsel %vm737_vm10, %v1228_v45, %v745_v48  ;;  %vm735_vm11 = vcmp.gt.f32.partialorder %v716_v53, 0.0  ;;  %v743_v56 = vmul.f32 0.01, %v716_v53  ;;  %v781_v47 = vld [vmem:[#allocation3] sm:$0x1] }
 0x267   : > { %v791_v59 = vsel %vm756_vm7, %v783_v51, 0.0  ;;  %850 = vst.msk [vmem:[#allocation4 + $0x4] sm:$0xf] %vm848_vm5, %v1181_v52  ;;  %v1186_v60 = vpack.c.bf16 %v753_v55, %v753_v55  ;;  %v1229_v61 = vpop.f32.mrf.mxu1  ;;  %v788_v17 = vmul.f32 %v753_v55, %v753_v55  ;;  %v768_v25 = vsel %vm756_vm7, %v753_v55, 0.0 }
 0x268   : > { %v761_v63 = vadd.f32 %v760_v42, %v759_v54  ;;  %v792_v0 = vadd.f32 %v791_v59, %v790_v57  ;;  %v751_v1 = vsel %vm735_vm11, %v716_v53, %v743_v56  ;;  %vm738_vm12 = vcmp.gt.f32.partialorder %v1229_v61, 0.0 }
 0x269   : > { %855 = vst.msk [vmem:[#allocation4 + $0x18] sm:$0xf] %vm848_vm5, %v1186_v60  ;;  %v786_v3 = vmul.f32 %v751_v1, %v751_v1  ;;  %v1184_v4 = vpack.c.bf16 %v751_v1, %v751_v1  ;;  %v719_v5 = vpop.f32.mrf.mxu1  ;;  %v746_v8 = vmul.f32 0.01, %v1229_v61  ;;  %v764_v11 = vsel %vm756_vm7, %v751_v1, 0.0 }
 0x26a   : > { %v794_v6 = vadd.f32 %v793_v62, %v792_v0  ;;  %v763_v7 = vadd.f32 %v762_v2, %v761_v63  ;;  %vm736_vm13 = vcmp.gt.f32.partialorder %v719_v5, 0.0  ;;  %v744_v12 = vmul.f32 0.01, %v719_v5 }
 0x26b   : > { %853 = vst.msk [vmem:[#allocation4 + $0x10] sm:$0xf] %vm848_vm5, %v1184_v4  ;;  %v754_v16 = vsel %vm738_vm12, %v1229_v61, %v746_v8  ;;  %v797_v18 = vsel %vm756_vm7, %v786_v3, 0.0  ;;  %v801_v29 = vsel %vm756_vm7, %v788_v17, 0.0 }
 0x26c   : > { %v765_v14 = vadd.f32 %v764_v11, %v763_v7  ;;  %v796_v15 = vadd.f32 %v795_v9, %v794_v6  ;;  %v1187_v19 = vpack.c.bf16 %v754_v16, %v754_v16  ;;  %v752_v20 = vsel %vm736_vm13, %v719_v5, %v744_v12 }
 0x26d   : > { %v766_v22 = vsel %vm756_vm7, %v752_v20, 0.0  ;;  %v787_v23 = vmul.f32 %v752_v20, %v752_v20  ;;  %v1185_v10 = vpack.c.bf16 %v752_v20, %v752_v20  ;;  %v789_v26 = vmul.f32 %v754_v16, %v754_v16 }
 0x26e   : > { %v798_v21 = vadd.f32 %v797_v18, %v796_v15  ;;  %856 = vst.msk [vmem:[#allocation4 + $0x1c] sm:$0xf] %vm848_vm5, %v1187_v19  ;;  %v767_v24 = vadd.f32 %v766_v22, %v765_v14  ;;  %v770_v30 = vsel %vm756_vm7, %v754_v16, 0.0 }
 0x26f   : > { %v799_v13 = vsel %vm756_vm7, %v787_v23, 0.0  ;;  %854 = vst.msk [vmem:[#allocation4 + $0x14] sm:$0xf] %vm848_vm5, %v1185_v10  ;;  %v803_v33 = vsel %vm756_vm7, %v789_v26, 0.0 }
 0x270   : > { %v769_v27 = vadd.f32 %v768_v25, %v767_v24  ;;  %v800_v28 = vadd.f32 %v799_v13, %v798_v21 }
 0x272   : > { %v771_v31 = vadd.f32 %v770_v30, %v769_v27  ;;  %v802_v32 = vadd.f32 %v801_v29, %v800_v28 }
 0x274   : > { %v772_v34 = vrot.slane %v771_v31, 4  ;;  %v804_v35 = vadd.f32 %v803_v33, %v802_v32 }
 0x276   : > { %v773_v36 = vadd.f32 %v772_v34, %v771_v31  ;;  %v805_v37 = vrot.slane %v804_v35, 4 }
 0x278   : > { %v774_v38 = vrot.slane %v773_v36, 2  ;;  %v806_v39 = vadd.f32 %v805_v37, %v804_v35 }
 0x27a   : > { %v775_v40 = vadd.f32 %v774_v38, %v773_v36  ;;  %v807_v41 = vrot.slane %v806_v39, 2 }
 0x27c   : > { %v776_v42 = vrot.slane %v775_v40, 1  ;;  %v808_v43 = vadd.f32 %v807_v41, %v806_v39 }
 0x27e   : > { %v777_v45 = vadd.f32 %v776_v42, %v775_v40  ;;  %v809_v46 = vrot.slane %v808_v43, 1 }
 0x280   : > { %v778_v48 = vadd.f32 %v777_v45, %v755_v44  ;;  %v810_v49 = vadd.f32 %v809_v46, %v808_v43 }
 0x282   : > { %780 = vst.msk [vmem:[#allocation2] sm:$0x1] %vm779_vm14, %v778_v48  ;;  %v811_v50 = vadd.f32 %v810_v49, %v781_v47 }
 0x284   : > { %812 = vst.msk [vmem:[#allocation3] sm:$0x1] %vm779_vm14, %v811_v50 }
 0x285 PF: > { %p1169_p6 = scmp.ne.s32.totalorder %s1300_s27, 1 }
 0x287   : > { %860 = sbr.rel (%p1169_p6) target bundleno = 895 (0x37f), region = 64 }
 0x28c   : > { %v1283_v51 = vld [vmem:[%s1499_s7] sm:$0xff]   ;;  %v895_v60 = vlaneseq  ;;  %v1205_v0 = vld [vmem:[#allocation4 + $0x10] sm:$0xff]   ;;  %v1204_v2 = vld [vmem:[#allocation4 + $0x8] sm:$0xff]   ;;  %vm934_vm15 = vcmask 130048  }
 0x28d   : > { %v861_v52 = vld [vmem:[#allocation2] sm:$0x1]  ;;  %v863_v53 = vld [vmem:[#allocation3] sm:$0x1]  ;;  %1230 = vmatprep.subr.bf16.mxu0 %v1283_v51  ;;  %1240 = vmatprep.subr.bf16.mxu1 %v1283_v51  ;;  %v1189_v63 = vld [vmem:[#allocation4] sm:$0xff]   ;;  %v1198_v8 = vunpack.c.l.bf16 %v1205_v0  ;;  %v1199_v11 = vunpack.c.h.bf16 %v1205_v0  ;;  %v1194_v12 = vunpack.c.l.bf16 %v1204_v2  ;;  %v1195_v14 = vunpack.c.h.bf16 %v1204_v2 }
 0x28e   : > { %v862_v54 = vmul.f32 0.015625, %v861_v52  ;;  %v864_v55 = vmul.f32 0.015625, %v863_v53  ;;  %1231 = vmatpush3.bf16.msra.mxu0 %v1283_v51  ;;  %1241 = vmatpush3.bf16.msra.mxu1 %v1283_v51  ;;  %v896_v61 = vshrl.u32 %v895_v60, 7  ;;  %v868_v62 = vld [vmem:[%s1497_s5] sm:$0x1]  ;;  %v1190_v6 = vunpack.c.l.bf16 %v1189_v63 }
 0x28f   : > { %v1206_v3 = vld [vmem:[#allocation4 + $0x18] sm:$0xff]   ;;  %v1191_v7 = vunpack.c.h.bf16 %v1189_v63 }
 0x290   : > { %v865_v56 = vmul.f32 %v862_v54, %v862_v54  ;;  %v897_v1 = vsub.s32 0, %v896_v61  ;;  %v872_v9 = vld [vmem:[%s1498_s6] sm:$0x1]  ;;  %v1202_v15 = vunpack.c.l.bf16 %v1206_v3  ;;  %v1203_v18 = vunpack.c.h.bf16 %v1206_v3 }
 0x292   : > { %v866_v57 = vsub.f32 %v864_v55, %v865_v56 }
 0x294   : > { %v867_v58 = vmax.f32 %v866_v57, 0.0 }
 0x296   : > { %v869_v59 = vadd.f32 1e-05, %v867_v58 }
 0x298   : > { %1284 = vrsqrt.f32 %v869_v59 }
 0x2a5   : > { %v1285_v4 = vpop.eup %1284 }
 0x2a6   : > { %v871_v5 = vmul.f32 %v1285_v4, %v868_v62 }
 0x2a8   : > { %v873_v16 = vmul.f32 %v871_v5, %v862_v54  ;;  %v898_v17 = vrot.slane %v871_v5, %v897_v1 }
 0x2aa   : > { %v874_v19 = vsub.f32 %v872_v9, %v873_v16  ;;  %v900_v20 = vmul.f32 %v1190_v6, %v898_v17  ;;  %v901_v21 = vmul.f32 %v1191_v7, %v898_v17  ;;  %v904_v22 = vmul.f32 %v1198_v8, %v898_v17 }
 0x2ab   : > { %v905_v23 = vmul.f32 %v1199_v11, %v898_v17  ;;  %v902_v10 = vmul.f32 %v1194_v12, %v898_v17  ;;  %v903_v24 = vmul.f32 %v1195_v14, %v898_v17  ;;  %v906_v25 = vmul.f32 %v1202_v15, %v898_v17 }
 0x2ac   : > { %v912_v26 = vrot.slane %v874_v19, %v897_v1  ;;  %v907_v13 = vmul.f32 %v1203_v18, %v898_v17 }
 0x2ae   : > { %v914_v27 = vadd.f32 %v912_v26, %v900_v20  ;;  %v915_v28 = vadd.f32 %v912_v26, %v901_v21  ;;  %v918_v29 = vadd.f32 %v912_v26, %v904_v22  ;;  %v919_v30 = vadd.f32 %v912_v26, %v905_v23 }
 0x2af   : > { %v916_v31 = vadd.f32 %v912_v26, %v902_v10  ;;  %v917_v32 = vadd.f32 %v912_v26, %v903_v24  ;;  %v920_v33 = vadd.f32 %v912_v26, %v906_v25  ;;  %v921_v34 = vadd.f32 %v912_v26, %v907_v13 }
 0x2b0   : > { %v922_v35 = vpack.c.bf16 %v915_v28, %v914_v27  ;;  %v924_v36 = vpack.c.bf16 %v919_v30, %v918_v29 }
 0x2b1   : > { %v923_v37 = vpack.c.bf16 %v917_v32, %v916_v31  ;;  %v925_v38 = vpack.c.bf16 %v921_v34, %v920_v33 }
 0x2b2   : > { %1232 = vmatprep.mubr.msk.bf16.mxu0 %vm934_vm15, %v922_v35  ;;  %1236 = vmatprep.mubr.msk.bf16.mxu1 %vm934_vm15, %v924_v36 }
 0x2b3   : > { %1233 = vmatmul.mubr.msk.bf16.vlgmr.msra.gmra.mxu0 %vm934_vm15, %v923_v37  ;;  %1237 = vmatmul.mubr.msk.bf16.vlgmr.msra.gmra.mxu1 %vm934_vm15, %v925_v38 }
 0x373   : > { %v1234_v39 = vpop.f32.mrf.mxu0  ;;  %v1238_v40 = vpop.f32.mrf.mxu1 }
 0x374   : > { %vm1014_vm0 = vcmp.gt.f32.partialorder %v1234_v39, 0.0  ;;  %v1022_v41 = vmul.f32 0.01, %v1234_v39  ;;  %vm1018_vm1 = vcmp.gt.f32.partialorder %v1238_v40, 0.0  ;;  %v1026_v42 = vmul.f32 0.01, %v1238_v40 }
 0x375   : > { %v981_v43 = vpop.f32.mrf.mxu0  ;;  %v997_v44 = vpop.f32.mrf.mxu1 }
 0x376   : > { %v1030_v45 = vsel %vm1014_vm0, %v1234_v39, %v1022_v41  ;;  %v1034_v46 = vsel %vm1018_vm1, %v1238_v40, %v1026_v42  ;;  %vm1012_vm2 = vcmp.gt.f32.partialorder %v981_v43, 0.0  ;;  %v1020_v47 = vmul.f32 0.01, %v981_v43 }
 0x377   : > { %1038 = vst [vmem:[%s1500_s8 + $0x10] sm:$0xff] %v1030_v45  ;;  %1042 = vst [vmem:[%s1500_s8 + $0x30] sm:$0xff] %v1034_v46  ;;  %vm1016_vm3 = vcmp.gt.f32.partialorder %v997_v44, 0.0  ;;  %v1024_v48 = vmul.f32 0.01, %v997_v44  ;;  %v1235_v49 = vpop.f32.mrf.mxu0  ;;  %v1239_v50 = vpop.f32.mrf.mxu1 }
 0x378   : > { %v1028_v51 = vsel %vm1012_vm2, %v981_v43, %v1020_v47  ;;  %vm1015_vm4 = vcmp.gt.f32.partialorder %v1235_v49, 0.0  ;;  %v1023_v52 = vmul.f32 0.01, %v1235_v49  ;;  %vm1019_vm5 = vcmp.gt.f32.partialorder %v1239_v50, 0.0 }
 0x379   : > { %1036 = vst [vmem:[%s1500_s8] sm:$0xff] %v1028_v51  ;;  %v1032_v53 = vsel %vm1016_vm3, %v997_v44, %v1024_v48  ;;  %v1027_v54 = vmul.f32 0.01, %v1239_v50  ;;  %v984_v55 = vpop.f32.mrf.mxu0  ;;  %v1000_v56 = vpop.f32.mrf.mxu1 }
 0x37a   : > { %1040 = vst [vmem:[%s1500_s8 + $0x20] sm:$0xff] %v1032_v53  ;;  %v1031_v57 = vsel %vm1015_vm4, %v1235_v49, %v1023_v52  ;;  %vm1013_vm6 = vcmp.gt.f32.partialorder %v984_v55, 0.0  ;;  %v1021_v58 = vmul.f32 0.01, %v984_v55  ;;  %vm1017_vm7 = vcmp.gt.f32.partialorder %v1000_v56, 0.0 }
 0x37b   : > { %1039 = vst [vmem:[%s1500_s8 + $0x18] sm:$0xff] %v1031_v57  ;;  %v1035_v59 = vsel %vm1019_vm5, %v1239_v50, %v1027_v54  ;;  %v1025_v60 = vmul.f32 0.01, %v1000_v56 }
 0x37c   : > { %1043 = vst [vmem:[%s1500_s8 + $0x38] sm:$0xff] %v1035_v59  ;;  %v1029_v61 = vsel %vm1013_vm6, %v984_v55, %v1021_v58 }
 0x37d   : > { %1037 = vst [vmem:[%s1500_s8 + $0x8] sm:$0xff] %v1029_v61  ;;  %v1033_v62 = vsel %vm1017_vm7, %v1000_v56, %v1025_v60 }
 0x37e   : > { %1041 = vst [vmem:[%s1500_s8 + $0x28] sm:$0xff] %v1033_v62 }
 0x37f PF: > { %s18_s29 = sadd.s32 1, %s1308_s29   ;;  %s1501_s27 = smov %s1304_s28 }
 0x380   : > { %p15_p7 = scmp.ge.s32.totalorder %s18_s29, 4   ;;  %s1502_s28 = smov %s1504_s30 }
 0x382   :  { %17 = sbr.rel (!%p15_p7) target bundleno = 2 (0x2), region = 102 }

</bundles_post_ra>
